<compile_context>
chip_gen: v5e
topology: v5e:2x2
jax: 0.10.0
libtpu: 0.0.40
codegen_flags: <defaults>
</compile_context>

<pallas_src>
import numpy as np
import jax
import jax.numpy as jnp
from jax.experimental import pallas as pl
from jax.experimental.pallas import tpu as pltpu


# ----------------------------------------------------------------------------
# Host-side structure matrices (built once per static shape at trace time)
# ----------------------------------------------------------------------------
def _blur_reflect_matrix(length):
    """R (length, n_out):  y = x @ R  ==  reflect-pad(1,2) + [1,3,3,1]/8 blur
    + stride-2 subsample along that axis (antialiased_cnns.BlurPool, filt=4)."""
    f = np.array([1.0, 3.0, 3.0, 1.0], np.float64) / 8.0
    n_out = (length + 3 - 4) // 2 + 1
    r = np.zeros((length, n_out), np.float64)
    for j in range(n_out):
        for k in range(4):
            q = 2 * j + k - 1                      # index into unpadded signal
            if q < 0:
                q = -q                             # reflect (no edge repeat)
            elif q >= length:
                q = 2 * length - 2 - q
            r[q, j] += f[k]
    return r.astype(np.float32)


def _blur_w_blockdiag(w_in, cin):
    """(Cin*W, Cin*Wo) block-diag horizontal blur for the HCW-flat maxpool
    output; rows at each channel's last (garbage) column are zero."""
    r = _blur_reflect_matrix(w_in - 1)             # (W-1, Wo)
    wo = r.shape[1]
    bd = np.zeros((cin * w_in, cin * wo), np.float32)
    for c in range(cin):
        bd[c * w_in: c * w_in + w_in - 1, c * wo: (c + 1) * wo] = r
    return bd


def _blur_h_blockdiag(h_in, batch):
    """(B*Ho, B*H) block-diag vertical blur (applied from the left); columns
    at each image's last (garbage) row are zero."""
    r = _blur_reflect_matrix(h_in - 1)             # (H-1, Ho)
    ho = r.shape[1]
    bd = np.zeros((batch * ho, batch * h_in), np.float32)
    for b in range(batch):
        bd[b * ho: (b + 1) * ho, b * h_in: b * h_in + h_in - 1] = r.T
    return bd


def _conv_band_mats(w, wo):
    """PyTorch conv weight (Cout, Cin, 3, 3) -> (Cin*wo, 3*Cout*wo); column
    blocks [ky=0 | ky=1 | ky=2]. Zero padding along W folded in."""
    cout, cin = w.shape[0], w.shape[1]
    xx = jnp.arange(wo)[:, None]                   # input column
    x = jnp.arange(wo)[None, :]                    # output column
    kx = xx - x + 1
    valid = ((kx >= 0) & (kx <= 2)).astype(w.dtype)
    kxc = jnp.clip(kx, 0, 2)
    blocks = []
    for ky in range(3):
        taps = w[:, :, ky, :]                      # (Cout, Cin, 3)
        band = taps[:, :, kxc] * valid[None, None]  # (Cout, Cin, wo_xx, wo_x)
        band = band.transpose(1, 2, 0, 3).reshape(cin * wo, cout * wo)
        blocks.append(band)
    return jnp.concatenate(blocks, axis=1)          # (Cin*wo, 3*Cout*wo)


def _pick_block_batch(n, ho):
    """Largest divisor B of N with B*Ho <= 256, B <= 16, and >= 2 grid steps
    whenever N >= 2 (keeps both v7x TensorCores busy)."""
    best = 1
    for b in range(1, n + 1):
        if n % b or b > 16 or b * ho > 256:
            continue
        if n >= 2 and n // b < 2:
            continue
        best = b
    return best


# ----------------------------------------------------------------------------
# Fused kernel: B images per grid step, everything stays in VMEM/vregs
# ----------------------------------------------------------------------------
def _down_layer_kernel(x_ref, rw_ref, rht_ref, w1_ref, b1_ref,
                       w2_ref, b2_ref, o_ref):
    bsz, h, cw = x_ref.shape                       # (B, H, Cin*W)
    _, ho, cowo = o_ref.shape                      # (B, Ho, Cout*Wo)
    bh = bsz * h
    m_rows = bsz * ho

    xf = x_ref[...].reshape(bh, cw).astype(jnp.float32)    # HCW-flat rows

    # --- MaxPool2d(2, stride=1): rolls + max; garbage rows/cols at image /
    #     channel boundaries are never read by the block-diag blur matrices.
    mv = jnp.maximum(xf, pltpu.roll(xf, bh - 1, axis=0))    # row r vs r+1
    m = jnp.maximum(mv, pltpu.roll(mv, cw - 1, axis=1))     # col l vs l+1

    # --- BlurPool (reflect pad + [1,3,3,1]/8, stride 2): two MXU matmuls ----
    aw = jnp.dot(m, rw_ref[...], preferred_element_type=jnp.float32)   # (BH, Cin*Wo)
    a = jnp.dot(rht_ref[...], aw, preferred_element_type=jnp.float32)  # (B*Ho, Cin*Wo)

    # --- boundary-row masks (zero ky=0 tap on each image's top row, ky=2 tap
    #     on each image's bottom row; also kills the circular roll wrap) -----
    j = jax.lax.broadcasted_iota(jnp.int32, (bsz, ho, cowo), 1).reshape(m_rows, cowo)
    not_top = j != 0
    not_bot = j != ho - 1

    # --- Conv3x3(pad=1) + LeakyReLU(0.01): one matmul + sublane rolls -------
    def conv3x3_lrelu(a_in, w_ref, b_ref):
        p = jnp.dot(a_in, w_ref[...], preferred_element_type=jnp.float32)  # (M, 3*Cout*Wo)
        p0 = p[:, :cowo]
        p1 = p[:, cowo:2 * cowo]
        p2 = p[:, 2 * cowo:]
        up = jnp.where(not_top, pltpu.roll(p0, 1, axis=0), 0.0)           # p0[r-1]
        dn = jnp.where(not_bot, pltpu.roll(p2, m_rows - 1, axis=0), 0.0)  # p2[r+1]
        y = p1 + up + dn + b_ref[...]
        return jnp.where(y > 0, y, 0.01 * y)

    h1 = conv3x3_lrelu(a, w1_ref, b1_ref)          # (M, Cout*Wo)
    h2 = conv3x3_lrelu(h1, w2_ref, b2_ref)         # (M, Cout*Wo)
    o_ref[...] = h2.reshape(bsz, ho, cowo).astype(o_ref.dtype)


# ----------------------------------------------------------------------------
# Wrapper: lane-dense input reshape, one pallas_call, tiny output reorder
# ----------------------------------------------------------------------------
def down_layer(x_nchw, w1, b1, w2, b2):
    n, cin, h, w = x_nchw.shape
    cout = w1.shape[0]
    assert h % 2 == 0 and w % 2 == 0
    ho, wo = h // 2, w // 2

    bsz = _pick_block_batch(n, ho)
    steps = n // bsz

    # Lane-dense input layout: (N, H, Cin*W), cheap XLA transpose/reshape.
    x_hcw = x_nchw.transpose(0, 2, 1, 3).reshape(n, h, cin * w)

    rw_bd = jnp.asarray(_blur_w_blockdiag(w, cin))            # (Cin*W, Cin*Wo)
    rht_bd = jnp.asarray(_blur_h_blockdiag(h, bsz))           # (B*Ho, B*H)
    w1m = _conv_band_mats(w1, wo)                             # (Cin*Wo, 3*Cout*Wo)
    b1r = jnp.repeat(b1, wo).reshape(1, cout * wo)
    w2m = _conv_band_mats(w2, wo)                             # (Cout*Wo, 3*Cout*Wo)
    b2r = jnp.repeat(b2, wo).reshape(1, cout * wo)

    out_flat = pl.pallas_call(
        _down_layer_kernel,
        out_shape=jax.ShapeDtypeStruct((n, ho, cout * wo), x_nchw.dtype),
        grid=(steps,),
        in_specs=[
            pl.BlockSpec((bsz, h, cin * w), lambda i: (i, 0, 0)),
            pl.BlockSpec((cin * w, cin * wo), lambda i: (0, 0)),
            pl.BlockSpec((bsz * ho, bsz * h), lambda i: (0, 0)),
            pl.BlockSpec((cin * wo, 3 * cout * wo), lambda i: (0, 0)),
            pl.BlockSpec((1, cout * wo), lambda i: (0, 0)),
            pl.BlockSpec((cout * wo, 3 * cout * wo), lambda i: (0, 0)),
            pl.BlockSpec((1, cout * wo), lambda i: (0, 0)),
        ],
        out_specs=pl.BlockSpec((bsz, ho, cout * wo), lambda i: (i, 0, 0)),
        compiler_params=pltpu.CompilerParams(
            dimension_semantics=("parallel",)),     # batch over v7x's 2 TCs
    )(x_hcw, rw_bd, rht_bd, w1m, b1r, w2m, b2r)

    # (N, Ho, Cout*Wo) -> NCHW : tiny metadata-level reorder in XLA
    return out_flat.reshape(n, ho, cout, wo).transpose(0, 2, 1, 3)


# ----------------------------------------------------------------------------
# Pure-JAX reference (mirrors the PyTorch module) for a correctness check
# ----------------------------------------------------------------------------
def _ref_forward(x, w1, b1, w2, b2):
    m = jnp.maximum(jnp.maximum(x[:, :, :-1, :-1], x[:, :, 1:, :-1]),
                    jnp.maximum(x[:, :, :-1, 1:], x[:, :, 1:, 1:]))
    f1 = jnp.array([1.0, 3.0, 3.0, 1.0], jnp.float32)
    f2 = jnp.outer(f1, f1) / 64.0
    mp = jnp.pad(m, ((0, 0), (0, 0), (1, 2), (1, 2)), mode="reflect")
    nb, c, hp, wp = mp.shape
    ho, wo = (hp - 4) // 2 + 1, (wp - 4) // 2 + 1
    b = jnp.zeros((nb, c, ho, wo), jnp.float32)
    for ky in range(4):
        for kx in range(4):
            b = b + f2[ky, kx] * mp[:, :, ky:ky + 2 * ho:2, kx:kx + 2 * wo:2]

    def conv(a, wgt, bias):
        ap = jnp.pad(a, ((0, 0), (0, 0), (1, 1), (1, 1)))
        out = bias[None, :, None, None]
        for ky in range(3):
            for kx in range(3):
                out = out + jnp.einsum("oc,nchw->nohw", wgt[:, :, ky, kx],
                                       ap[:, :, ky:ky + ho, kx:kx + wo])
        return jnp.where(out > 0, out, 0.01 * out)

    return conv(conv(b, w1, b1), w2, b2)


if __name__ == "__main__":
    N, Cin, H, W = 2, 4, 16, 16
    Cout = 8

    key = jax.random.PRNGKey(0)
    kx, kw1, kb1, kw2, kb2 = jax.random.split(key, 5)
    x = jax.random.normal(kx, (N, Cin, H, W), jnp.float32)
    # PyTorch nn.Conv2d parameter layouts: weight (Cout, Cin, 3, 3), bias (Cout,)
    w1 = jax.random.normal(kw1, (Cout, Cin, 3, 3), jnp.float32) * 0.1
    b1 = jax.random.normal(kb1, (Cout,), jnp.float32) * 0.1
    w2 = jax.random.normal(kw2, (Cout, Cout, 3, 3), jnp.float32) * 0.1
    b2 = jax.random.normal(kb2, (Cout,), jnp.float32) * 0.1

    out = jax.jit(down_layer)(x, w1, b1, w2, b2)
    out = jax.block_until_ready(out)
    assert out.shape == (N, Cout, H // 2, W // 2), out.shape
    assert jnp.all(jnp.isfinite(out))

    ref = _ref_forward(x, w1, b1, w2, b2)
    err = float(jnp.max(jnp.abs(out - ref)))
    assert err < 1e-4, f"mismatch vs reference: max abs err = {err}"
    print("KERNEL_OK")
</pallas_src>

<mosaic_0001>
module attributes {stable_mosaic.version = 11 : i64} {
  func.func @_down_layer_kernel(%arg0: i32, %arg1: memref<1x16x64xf32, #tpu.memory_space<vmem>>, %arg2: memref<64x32xf32, #tpu.memory_space<vmem>>, %arg3: memref<8x16xf32, #tpu.memory_space<vmem>>, %arg4: memref<32x192xf32, #tpu.memory_space<vmem>>, %arg5: memref<1x64xf32, #tpu.memory_space<vmem>>, %arg6: memref<64x192xf32, #tpu.memory_space<vmem>>, %arg7: memref<1x64xf32, #tpu.memory_space<vmem>>, %arg8: memref<1x8x64xf32, #tpu.memory_space<vmem>>) attributes {dimension_semantics = [#tpu.dimension_semantics<parallel>], iteration_bounds = array<i64: 2>, scalar_prefetch = 0 : i64, scratch_operands = 0 : i64, tpu.core_type = #tpu.core_type<tc>, window_params = [{transform_indices = @transform_0, window_bounds = array<i64: 1, 16, 64>}, {pipeline_mode = #tpu.pipeline_mode<synchronous>, transform_indices = @transform_1, window_bounds = array<i64: 64, 32>}, {pipeline_mode = #tpu.pipeline_mode<synchronous>, transform_indices = @transform_2, window_bounds = array<i64: 8, 16>}, {pipeline_mode = #tpu.pipeline_mode<synchronous>, transform_indices = @transform_3, window_bounds = array<i64: 32, 192>}, {pipeline_mode = #tpu.pipeline_mode<synchronous>, transform_indices = @transform_4, window_bounds = array<i64: 1, 64>}, {pipeline_mode = #tpu.pipeline_mode<synchronous>, transform_indices = @transform_5, window_bounds = array<i64: 64, 192>}, {pipeline_mode = #tpu.pipeline_mode<synchronous>, transform_indices = @transform_6, window_bounds = array<i64: 1, 64>}, {transform_indices = @transform_7, window_bounds = array<i64: 1, 8, 64>}]} {
    %c0 = arith.constant 0 : index
    %c0_0 = arith.constant 0 : index
    %c0_1 = arith.constant 0 : index
    %0 = vector.load %arg1[%c0, %c0_0, %c0_1] : memref<1x16x64xf32, #tpu.memory_space<vmem>>, vector<1x16x64xf32>
    %1 = vector.shape_cast %0 : vector<1x16x64xf32> to vector<16x64xf32>
    %c15_i32 = arith.constant 15 : i32
    %2 = tpu.dynamic_rotate %1 by %c15_i32 dim 0 : vector<16x64xf32>, i32 -> vector<16x64xf32>
    %3 = arith.maximumf %1, %2 : vector<16x64xf32>
    %c63_i32 = arith.constant 63 : i32
    %4 = tpu.dynamic_rotate %3 by %c63_i32 dim 1 : vector<16x64xf32>, i32 -> vector<16x64xf32>
    %5 = arith.maximumf %3, %4 : vector<16x64xf32>
    %c0_2 = arith.constant 0 : index
    %c0_3 = arith.constant 0 : index
    %6 = vector.load %arg2[%c0_2, %c0_3] : memref<64x32xf32, #tpu.memory_space<vmem>>, vector<64x32xf32>
    %cst = arith.constant dense<0.000000e+00> : vector<16x32xf32>
    %7 = tpu.matmul %5, %6, %cst {dimension_numbers = #tpu.dot_dimension_numbers<[1], [0], [0], [1], [0, 0, 1, 1], [], []>} : vector<16x64xf32>, vector<64x32xf32>, vector<16x32xf32> -> vector<16x32xf32>
    %c0_4 = arith.constant 0 : index
    %c0_5 = arith.constant 0 : index
    %8 = vector.load %arg3[%c0_4, %c0_5] : memref<8x16xf32, #tpu.memory_space<vmem>>, vector<8x16xf32>
    %cst_6 = arith.constant dense<0.000000e+00> : vector<8x32xf32>
    %9 = tpu.matmul %8, %7, %cst_6 {dimension_numbers = #tpu.dot_dimension_numbers<[1], [0], [0], [1], [0, 0, 1, 1], [], []>} : vector<8x16xf32>, vector<16x32xf32>, vector<8x32xf32> -> vector<8x32xf32>
    %10 = tpu.iota {dimensions = array<i32: 1>} : vector<1x8x64xi32>
    %11 = vector.shape_cast %10 : vector<1x8x64xi32> to vector<8x64xi32>
    %c0_i32 = arith.constant 0 : i32
    %12 = vector.broadcast %c0_i32 : i32 to vector<8x64xi32>
    %13 = arith.cmpi ne, %11, %12 : vector<8x64xi32>
    %c7_i32 = arith.constant 7 : i32
    %14 = vector.broadcast %c7_i32 : i32 to vector<8x64xi32>
    %15 = arith.cmpi ne, %11, %14 : vector<8x64xi32>
    %c0_7 = arith.constant 0 : index
    %c0_8 = arith.constant 0 : index
    %16 = vector.load %arg4[%c0_7, %c0_8] : memref<32x192xf32, #tpu.memory_space<vmem>>, vector<32x192xf32>
    %cst_9 = arith.constant dense<0.000000e+00> : vector<8x192xf32>
    %17 = tpu.matmul %9, %16, %cst_9 {dimension_numbers = #tpu.dot_dimension_numbers<[1], [0], [0], [1], [0, 0, 1, 1], [], []>} : vector<8x32xf32>, vector<32x192xf32>, vector<8x192xf32> -> vector<8x192xf32>
    %18 = vector.extract_strided_slice %17 {offsets = [0, 0], sizes = [8, 64], strides = [1, 1]} : vector<8x192xf32> to vector<8x64xf32>
    %19 = vector.extract_strided_slice %17 {offsets = [0, 64], sizes = [8, 64], strides = [1, 1]} : vector<8x192xf32> to vector<8x64xf32>
    %20 = vector.extract_strided_slice %17 {offsets = [0, 128], sizes = [8, 64], strides = [1, 1]} : vector<8x192xf32> to vector<8x64xf32>
    %c1_i32 = arith.constant 1 : i32
    %21 = tpu.dynamic_rotate %18 by %c1_i32 dim 0 : vector<8x64xf32>, i32 -> vector<8x64xf32>
    %cst_10 = arith.constant 0.000000e+00 : f32
    %22 = vector.broadcast %cst_10 : f32 to vector<8x64xf32>
    %23 = arith.select %13, %21, %22 : vector<8x64xi1>, vector<8x64xf32>
    %c7_i32_11 = arith.constant 7 : i32
    %24 = tpu.dynamic_rotate %20 by %c7_i32_11 dim 0 : vector<8x64xf32>, i32 -> vector<8x64xf32>
    %cst_12 = arith.constant 0.000000e+00 : f32
    %25 = vector.broadcast %cst_12 : f32 to vector<8x64xf32>
    %26 = arith.select %15, %24, %25 : vector<8x64xi1>, vector<8x64xf32>
    %27 = arith.addf %19, %23 : vector<8x64xf32>
    %28 = arith.addf %27, %26 : vector<8x64xf32>
    %c0_13 = arith.constant 0 : index
    %c0_14 = arith.constant 0 : index
    %29 = vector.load %arg5[%c0_13, %c0_14] : memref<1x64xf32, #tpu.memory_space<vmem>>, vector<1x64xf32>
    %30 = vector.broadcast %29 : vector<1x64xf32> to vector<8x64xf32>
    %31 = arith.addf %28, %30 : vector<8x64xf32>
    %cst_15 = arith.constant 0.000000e+00 : f32
    %32 = vector.broadcast %cst_15 : f32 to vector<8x64xf32>
    %33 = arith.cmpf ogt, %31, %32 : vector<8x64xf32>
    %cst_16 = arith.constant 0.00999999977 : f32
    %34 = vector.broadcast %cst_16 : f32 to vector<8x64xf32>
    %35 = arith.mulf %34, %31 : vector<8x64xf32>
    %36 = arith.select %33, %31, %35 : vector<8x64xi1>, vector<8x64xf32>
    %c0_17 = arith.constant 0 : index
    %c0_18 = arith.constant 0 : index
    %37 = vector.load %arg6[%c0_17, %c0_18] : memref<64x192xf32, #tpu.memory_space<vmem>>, vector<64x192xf32>
    %cst_19 = arith.constant dense<0.000000e+00> : vector<8x192xf32>
    %38 = tpu.matmul %36, %37, %cst_19 {dimension_numbers = #tpu.dot_dimension_numbers<[1], [0], [0], [1], [0, 0, 1, 1], [], []>} : vector<8x64xf32>, vector<64x192xf32>, vector<8x192xf32> -> vector<8x192xf32>
    %39 = vector.extract_strided_slice %38 {offsets = [0, 0], sizes = [8, 64], strides = [1, 1]} : vector<8x192xf32> to vector<8x64xf32>
    %40 = vector.extract_strided_slice %38 {offsets = [0, 64], sizes = [8, 64], strides = [1, 1]} : vector<8x192xf32> to vector<8x64xf32>
    %41 = vector.extract_strided_slice %38 {offsets = [0, 128], sizes = [8, 64], strides = [1, 1]} : vector<8x192xf32> to vector<8x64xf32>
    %c1_i32_20 = arith.constant 1 : i32
    %42 = tpu.dynamic_rotate %39 by %c1_i32_20 dim 0 : vector<8x64xf32>, i32 -> vector<8x64xf32>
    %cst_21 = arith.constant 0.000000e+00 : f32
    %43 = vector.broadcast %cst_21 : f32 to vector<8x64xf32>
    %44 = arith.select %13, %42, %43 : vector<8x64xi1>, vector<8x64xf32>
    %c7_i32_22 = arith.constant 7 : i32
    %45 = tpu.dynamic_rotate %41 by %c7_i32_22 dim 0 : vector<8x64xf32>, i32 -> vector<8x64xf32>
    %cst_23 = arith.constant 0.000000e+00 : f32
    %46 = vector.broadcast %cst_23 : f32 to vector<8x64xf32>
    %47 = arith.select %15, %45, %46 : vector<8x64xi1>, vector<8x64xf32>
    %48 = arith.addf %40, %44 : vector<8x64xf32>
    %49 = arith.addf %48, %47 : vector<8x64xf32>
    %c0_24 = arith.constant 0 : index
    %c0_25 = arith.constant 0 : index
    %50 = vector.load %arg7[%c0_24, %c0_25] : memref<1x64xf32, #tpu.memory_space<vmem>>, vector<1x64xf32>
    %51 = vector.broadcast %50 : vector<1x64xf32> to vector<8x64xf32>
    %52 = arith.addf %49, %51 : vector<8x64xf32>
    %cst_26 = arith.constant 0.000000e+00 : f32
    %53 = vector.broadcast %cst_26 : f32 to vector<8x64xf32>
    %54 = arith.cmpf ogt, %52, %53 : vector<8x64xf32>
    %cst_27 = arith.constant 0.00999999977 : f32
    %55 = vector.broadcast %cst_27 : f32 to vector<8x64xf32>
    %56 = arith.mulf %55, %52 : vector<8x64xf32>
    %57 = arith.select %54, %52, %56 : vector<8x64xi1>, vector<8x64xf32>
    %58 = vector.shape_cast %57 : vector<8x64xf32> to vector<1x8x64xf32>
    %c0_28 = arith.constant 0 : index
    %c0_29 = arith.constant 0 : index
    %c0_30 = arith.constant 0 : index
    %59 = vector.load %arg8[%c0_28, %c0_29, %c0_30] : memref<1x8x64xf32, #tpu.memory_space<vmem>>, vector<1x8x64xf32>
    tpu.vector_store %arg8[%c0_28, %c0_29, %c0_30], %58 {strides = array<i32>} : memref<1x8x64xf32, #tpu.memory_space<vmem>>, vector<1x8x64xf32>,
    return
  }
  func.func @transform_0(%arg0: i32) -> (i32, i32, i32) {
    %c0_i32 = arith.constant 0 : i32
    %c0_i32_0 = arith.constant 0 : i32
    %c0_i32_1 = arith.constant 0 : i32
    return %arg0, %c0_i32, %c0_i32_0 : i32, i32, i32
  }
  func.func @transform_1(%arg0: i32) -> (i32, i32) {
    %c0_i32 = arith.constant 0 : i32
    %c0_i32_0 = arith.constant 0 : i32
    %c0_i32_1 = arith.constant 0 : i32
    return %c0_i32, %c0_i32_0 : i32, i32
  }
  func.func @transform_2(%arg0: i32) -> (i32, i32) {
    %c0_i32 = arith.constant 0 : i32
    %c0_i32_0 = arith.constant 0 : i32
    %c0_i32_1 = arith.constant 0 : i32
    return %c0_i32, %c0_i32_0 : i32, i32
  }
  func.func @transform_3(%arg0: i32) -> (i32, i32) {
    %c0_i32 = arith.constant 0 : i32
    %c0_i32_0 = arith.constant 0 : i32
    %c0_i32_1 = arith.constant 0 : i32
    return %c0_i32, %c0_i32_0 : i32, i32
  }
  func.func @transform_4(%arg0: i32) -> (i32, i32) {
    %c0_i32 = arith.constant 0 : i32
    %c0_i32_0 = arith.constant 0 : i32
    %c0_i32_1 = arith.constant 0 : i32
    return %c0_i32, %c0_i32_0 : i32, i32
  }
  func.func @transform_5(%arg0: i32) -> (i32, i32) {
    %c0_i32 = arith.constant 0 : i32
    %c0_i32_0 = arith.constant 0 : i32
    %c0_i32_1 = arith.constant 0 : i32
    return %c0_i32, %c0_i32_0 : i32, i32
  }
  func.func @transform_6(%arg0: i32) -> (i32, i32) {
    %c0_i32 = arith.constant 0 : i32
    %c0_i32_0 = arith.constant 0 : i32
    %c0_i32_1 = arith.constant 0 : i32
    return %c0_i32, %c0_i32_0 : i32, i32
  }
  func.func @transform_7(%arg0: i32) -> (i32, i32, i32) {
    %c0_i32 = arith.constant 0 : i32
    %c0_i32_0 = arith.constant 0 : i32
    %c0_i32_1 = arith.constant 0 : i32
    return %arg0, %c0_i32, %c0_i32_0 : i32, i32, i32
  }
}

</mosaic_0001>

<bundles_post_ra>
// kernel: down_layer.1
= control target key start
LH: loop header
LB: loop body
LE: loop exit
PB: predicated region body
PF: predicated region fallthrough
CT: control target
= control target key end

     0   :  { %s675_s24 = smov 0   ;;  %s835_s0 = inlined_call_operand.vmem [shape: f32[2,16,64], index: 0, kind: input, shape index: {}]   ;;  %s836_s1 = inlined_call_operand.vmem [shape: f32[64,32], index: 1, kind: input, shape index: {}]   ;;  %s837_s2 = inlined_call_operand.vmem [shape: f32[8,16], index: 2, kind: input, shape index: {}]   ;;  %s838_s3 = inlined_call_operand.vmem [shape: f32[32,192], index: 3, kind: input, shape index: {}]   ;;  %s839_s4 = inlined_call_operand.vmem [shape: f32[1,64], index: 4, kind: input, shape index: {}]   ;;  %s840_s5 = inlined_call_operand.vmem [shape: f32[64,192], index: 5, kind: input, shape index: {}]   ;;  %s841_s6 = inlined_call_operand.vmem [shape: f32[1,64], index: 6, kind: input, shape index: {}]   ;;  %s842_s7 = inlined_call_operand.vmem [shape: f32[2,8,64], index: 7, kind: output, shape index: {}]  }
   0x1 LB: > { %s595_s25 = sadd.s32 4294967295, %s631_s24   ;;  %p599_p0 = scmp.ge.s32.totalorder %s631_s24, 1  ;;  %s631_s24 = sphi %s675_s24, %s17_s24  }
   0x2   : > { %p237_p1 = scmp.lt.s32.totalorder %s631_s24, 3 }
   0x4   : > { %p238_p2 = pnand %p599_p0, %p237_p1 }
   0x5   : > { %p268_p3 = scmp.lt.s32.totalorder (!%p238_p2), %s595_s25, 1  ;;  %s633_s30 = smov (!%p238_p2), 64  }
   0x6   : > { %241 = sbr.rel (%p238_p2) target bundleno = 1351 (0x547), region = 48  ;;  %s634_s22 = smov (!%p238_p2), 127  }
   0xb   : > { %v281_v0 = vlaneseq  ;;  %s844_s25 = smov (!%p268_p3, %s595_s25), 1  ;;  %vm288_vm1 = vcmask 1048064   ;;  %v318_v14 = vld [vmem:[%s836_s1 + $0x38] sm:$0xff]  ;;  %v317_v15 = vld [vmem:[%s836_s1 + $0x30] sm:$0xff]  ;;  %v316_v16 = vld [vmem:[%s836_s1 + $0x28] sm:$0xff]  ;;  %vm319_vm2 = vcmask 523264  }
   0xc   : > { %s612_s26 = sshll.u32 %s844_s25, 4  ;;  %334 = vmatpush.msra.mxu0 %v318_v14  ;;  %v315_v17 = vld [vmem:[%s836_s1 + $0x20] sm:$0xff]  ;;  %v314_v18 = vld [vmem:[%s836_s1 + $0x18] sm:$0xff]  ;;  %v313_v19 = vld [vmem:[%s836_s1 + $0x10] sm:$0xff]  ;;  %vm350_vm3 = vcmask 130048   ;;  %vm384_vm4 = vcmask 261120  }
   0xd   : > { %v685_v1 = vshrl.u32 %v281_v0, 7  ;;  %s272_s29 = scalar_lea.vmem %s835_s0, %s612_s26  ;;  %v312_v20 = vld [vmem:[%s836_s1 + $0x8] sm:$0xff]  ;;  %v311_v25 = vld [vmem:[%s836_s1] sm:$0xff]  ;;  %v382_v30 = vld [vmem:[%s838_s3 + $0x30] sm:$0xff]  ;;  %s602_s19 = sshll.u32 %s844_s25, 3 }
   0xe   : > { %v277_v2 = vld [vmem:[%s272_s29] sm:$0xff]  ;;  %v278_v3 = vld [vmem:[%s272_s29 + $0x8] sm:$0xff]  ;;  %335 = vmatpush.msra.mxu0 %v317_v15  ;;  %v383_v31 = vld [vmem:[%s838_s3 + $0x38] sm:$0xff]  ;;  %400 = vmatpush.msra.mxu2 %v382_v30 }
   0xf   : > { %vm283_vm0 = vcmp.lt.s32.totalorder %v685_v1, 7  ;;  %v279_v4 = vrot.slane %v277_v2, 1  ;;  %v280_v5 = vrot.slane %v278_v3, 1  ;;  %v380_v32 = vld [vmem:[%s838_s3 + $0x20] sm:$0xff]  ;;  %420 = vmatpush.msra.mxu3 %v383_v31  ;;  %v381_v33 = vld [vmem:[%s838_s3 + $0x28] sm:$0xff]  ;;  %v378_v34 = vld [vmem:[%s838_s3 + $0x10] sm:$0xff] }
  0x10   : > { %336 = vmatpush.msra.mxu0 %v316_v16  ;;  %v379_v35 = vld [vmem:[%s838_s3 + $0x18] sm:$0xff]  ;;  %401 = vmatpush.msra.mxu2 %v380_v32  ;;  %v349_v38 = vld [vmem:[%s837_s2] sm:$0xff]  ;;  %v377_v40 = vld [vmem:[%s838_s3 + $0x8] sm:$0xff]  ;;  %vm375_vm5 = vcmp.ne.s32.totalorder %v685_v1, 7  ;;  %vm374_vm6 = vcmp.ne.s32.totalorder %v685_v1, 0 }
  0x11   : > { %v284_v6 = vsel %vm283_vm0, %v279_v4, %v280_v5  ;;  %v285_v8 = vsel %vm283_vm0, %v280_v5, %v279_v4  ;;  %421 = vmatpush.msra.mxu3 %v381_v33  ;;  %v376_v39 = vld [vmem:[%s838_s3] sm:$0xff]  ;;  %v466_v49 = vld [vmem:[%s840_s5 + $0x70] sm:$0xff]  ;;  %v467_v50 = vld [vmem:[%s840_s5 + $0x78] sm:$0xff] }
  0x12   : > { %v286_v7 = vmax.f32 %v277_v2, %v284_v6  ;;  %v287_v9 = vmax.f32 %v278_v3, %v285_v8  ;;  %337 = vmatpush.msra.mxu0 %v315_v17  ;;  %402 = vmatpush.msra.mxu2 %v378_v34  ;;  %v623_v42 = vld [vmem:[%s839_s4] ss:$0 sm:$0xff]  ;;  %v465_v52 = vld [vmem:[%s840_s5 + $0x68] sm:$0xff]  ;;  %v462_v53 = vld [vmem:[%s840_s5 + $0x50] sm:$0xff] }
  0x13   : > { %422 = vmatpush.msra.mxu3 %v379_v35  ;;  %v464_v51 = vld [vmem:[%s840_s5 + $0x60] sm:$0xff]  ;;  %v463_v54 = vld [vmem:[%s840_s5 + $0x58] sm:$0xff]  ;;  %v461_v56 = vld [vmem:[%s840_s5 + $0x48] sm:$0xff] }
  0x14   : > { %289 = vrot.lane.b32.xlu0 %v286_v7, %s633_s30  ;;  %338 = vmatpush.msra.mxu0 %v314_v18  ;;  %v460_v55 = vld [vmem:[%s840_s5 + $0x40] sm:$0xff]  ;;  %v458_v57 = vld [vmem:[%s840_s5 + $0x30] sm:$0xff]  ;;  %v459_v58 = vld [vmem:[%s840_s5 + $0x38] sm:$0xff] }
  0x15   : > { %403 = vmatpush.msra.mxu2 %v376_v39  ;;  %423 = vmatpush.msra.mxu3 %v377_v40  ;;  %v456_v59 = vld [vmem:[%s840_s5 + $0x20] sm:$0xff]  ;;  %v457_v60 = vld [vmem:[%s840_s5 + $0x28] sm:$0xff]  ;;  %v454_v61 = vld [vmem:[%s840_s5 + $0x10] sm:$0xff] }
  0x16   : > { %339 = vmatpush.msra.mxu0 %v313_v19  ;;  %v455_v62 = vld [vmem:[%s840_s5 + $0x18] sm:$0xff]  ;;  %v452_v63 = vld [vmem:[%s840_s5] sm:$0xff]  ;;  %v453_v0 = vld [vmem:[%s840_s5 + $0x8] sm:$0xff] }
  0x17   : > { %501 = vmatpush.msrb.mxu2 %v467_v50 }
  0x18   : > { %340 = vmatpush.msra.mxu0 %v312_v20 }
  0x19   : > { %502 = vmatpush.msrb.mxu2 %v465_v52 }
  0x1a   : > { %341 = vmatpush.msra.mxu0 %v311_v25 }
  0x1b   : > { %503 = vmatpush.msrb.mxu2 %v463_v54 }
  0x1c   : > { %292 = vrot.lane.b32.xlu0 %v287_v9, %s633_s30 }
  0x1d   : > { %504 = vmatpush.msrb.mxu2 %v461_v56 }
  0x1f   : > { %505 = vmatpush.msrb.mxu2 %v459_v58 }
  0x21   : > { %506 = vmatpush.msrb.mxu2 %v457_v60 }
  0x23   : > { %507 = vmatpush.msrb.mxu2 %v455_v62 }
  0x25   : > { %508 = vmatpush.msrb.mxu2 %v453_v0 }
  0x86   : > { %v290_v10 = vpop.permute.xlu0 %289 }
  0x87   : > { %v291_v11 = vsel %vm288_vm1, %v290_v10, %v286_v7 }
  0x88   : > { %295 = vrot.lane.b32.xlu1 %v291_v11, %s633_s30  ;;  %v624_v11 = vld [vmem:[%s841_s6] ss:$0 sm:$0xff] }
  0x8e   : > { %v293_v12 = vpop.permute.xlu0 %292 }
  0x8f   : > { %v294_v13 = vsel %vm288_vm1, %v293_v12, %v287_v9 }
  0x90   : > { %297 = vrot.lane.b32.xlu1 %v294_v13, %s633_s30 }
  0xfa   : > { %v296_v21 = vpop.permute.xlu1 %295 }
  0xfb   : > { %v299_v22 = vsel %vm288_vm1, %v296_v21, %v286_v7 }
  0xfc   : > { %303 = vrot.lane.b32.xlu2 %v299_v22, %s634_s22 }
 0x102   : > { %v298_v23 = vpop.permute.xlu1 %297 }
 0x103   : > { %v300_v24 = vsel %vm288_vm1, %v298_v23, %v287_v9 }
 0x104   : > { %305 = vrot.lane.b32.xlu2 %v300_v24, %s634_s22  ;;  %s276_s22 = scalar_lea.vmem %s842_s7, %s602_s19 }
 0x10c   : > { %445 = vrot.lane.b32.xlu2 %v623_v42, %s633_s30 }
 0x156   : > { %v304_v26 = vpop.permute.xlu2 %303 }
 0x157   : > { %v309_v27 = vmax.f32 %v286_v7, %v304_v26 }
 0x159   : > { %603 = vmatmul.msk.f32.vlgmr.msra.gmra.mxu0 %vm319_vm2, %v309_v27 }
 0x15e   : > { %v306_v28 = vpop.permute.xlu2 %305 }
 0x15f   : > { %v310_v29 = vmax.f32 %v287_v9, %v306_v28 }
 0x161   : > { %604 = vmatmul.msk.f32.gmra.mxu0 %vm319_vm2, %v310_v29 }
 0x166   : > { %v446_v5 = vpop.permute.xlu2 %445 }
 0x1d6   : > { %v343_v36 = vpop.f32.mrf.mxu0 }
 0x1de   : > { %v346_v37 = vpop.f32.mrf.mxu0 }
 0x1df   : > { %368 = vmatpush.msra.mxu1 %v346_v37 }
 0x1e1   : > { %369 = vmatpush.msra.mxu1 %v343_v36 }
 0x1e2   : > { %605 = vmatmul.msk.f32.vlgmr.msra.gmra.mxu1 %vm350_vm3, %v349_v38 }
 0x1e3   : > { %481 = vmatpush.msrb.mxu1 %v466_v49 }
 0x1e5   : > { %482 = vmatpush.msrb.mxu1 %v464_v51 }
 0x1e7   : > { %483 = vmatpush.msrb.mxu1 %v462_v53 }
 0x1e9   : > { %484 = vmatpush.msrb.mxu1 %v460_v55 }
 0x1eb   : > { %485 = vmatpush.msrb.mxu1 %v458_v57 }
 0x1ed   : > { %486 = vmatpush.msrb.mxu1 %v456_v59 }
 0x1ef   : > { %487 = vmatpush.msrb.mxu1 %v454_v61 }
 0x1f1   : > { %488 = vmatpush.msrb.mxu1 %v452_v63 }
 0x25f   : > { %v371_v41 = vpop.f32.mrf.mxu1 }
 0x260   : > { %606 = vmatmul.msk.f32.vlgmr.msra.gmra.mxu2 %vm384_vm4, %v371_v41  ;;  %607 = vmatmul.msk.f32.vlgmr.msra.gmra.mxu3 %vm384_vm4, %v371_v41 }
 0x2e3   : > { %v405_v43 = vpop.f32.mrf.mxu2  ;;  %v425_v44 = vpop.f32.mrf.mxu3 }
 0x2e4   : > { %v428_v45 = vrot.slane %v405_v43, 7  ;;  %v430_v46 = vrot.slane %v425_v44, 1 }
 0x2e6   : > { %v431_v47 = vsel %vm375_vm5, %v430_v46, 0.0  ;;  %v429_v48 = vsel %vm374_vm6, %v428_v45, 0.0 }
 0x2e7   : > { %438 = vrot.lane.b32.xlu1 %v431_v47, %s633_s30  ;;  %433 = vrot.lane.b32.xlu0 %v429_v48, %s633_s30 }
 0x359   : > { %v434_v2 = vpop.permute.xlu0 %433  ;;  %v439_v4 = vpop.permute.xlu1 %438 }
 0x35a   : > { %v436_v3 = vadd.f32 %v434_v2, %v405_v43 }
 0x35c   : > { %v441_v6 = vadd.f32 %v439_v4, %v436_v3 }
 0x35e   : > { %v448_v7 = vadd.f32 %v446_v5, %v441_v6 }
 0x360   : > { %v450_v8 = vmul.f32 0.01, %v448_v7  ;;  %vm449_vm7 = vcmp.gt.f32.partialorder %v448_v7, 0.0 }
 0x362   : > { %v451_v9 = vsel %vm449_vm7, %v448_v7, %v450_v8 }
 0x363   : > { %469 = vrot.lane.b32.xlu0 %v451_v9, %s633_s30 }
 0x36b   : > { %530 = vrot.lane.b32.xlu0 %v624_v11, %s633_s30 }
 0x3d5   : > { %v470_v10 = vpop.permute.xlu0 %469 }
 0x3d6   : > { %608 = vmatmul.msk.f32.vlgmr.msrb.gmra.mxu1 %vm319_vm2, %v470_v10  ;;  %609 = vmatmul.msk.f32.vlgmr.msrb.gmra.mxu2 %vm319_vm2, %v470_v10 }
 0x3dd   : > { %v531_v21 = vpop.permute.xlu0 %530 }
 0x453   : > { %v490_v12 = vpop.f32.mrf.mxu1 }
 0x454   : > { %v513_v13 = vrot.slane %v490_v12, 7 }
 0x456   : > { %v514_v14 = vsel %vm374_vm6, %v513_v13, 0.0 }
 0x457   : > { %518 = vrot.lane.b32.xlu1 %v514_v14, %s633_s30 }
 0x459   : > { %v510_v15 = vpop.f32.mrf.mxu2 }
 0x45a   : > { %v515_v16 = vrot.slane %v510_v15, 1 }
 0x45c   : > { %v516_v17 = vsel %vm375_vm5, %v515_v16, 0.0 }
 0x45d   : > { %523 = vrot.lane.b32.xlu2 %v516_v17, %s633_s30 }
 0x4b7   : > { %v524_v20 = vpop.permute.xlu2 %523 }
 0x4c9   : > { %v519_v18 = vpop.permute.xlu1 %518 }
 0x4ca   : > { %v521_v19 = vadd.f32 %v519_v18, %v490_v12 }
 0x4cc   : > { %v526_v22 = vadd.f32 %v524_v20, %v521_v19 }
 0x4ce   : > { %v533_v23 = vadd.f32 %v531_v21, %v526_v22 }
 0x4d0   : > { %v535_v24 = vmul.f32 0.01, %v533_v23  ;;  %vm534_vm8 = vcmp.gt.f32.partialorder %v533_v23, 0.0 }
 0x4d2   : > { %v536_v25 = vsel %vm534_vm8, %v533_v23, %v535_v24 }
 0x4d3   : > { %538 = vrot.lane.b32.xlu1 %v536_v25, %s633_s30 }
 0x545   : > { %v539_v1 = vpop.permute.xlu1 %538 }
 0x546   : > { %541 = vst.msk [vmem:[%s276_s22] sm:$0xff] %vm319_vm2, %v539_v1 }
 0x547 PF: > { %s17_s24 = sadd.s32 1, %s631_s24  }
 0x548   : > { %p14_p4 = scmp.ge.s32.totalorder %s17_s24, 4  }
 0x54a   :  { %16 = sbr.rel (!%p14_p4) target bundleno = 1 (0x1), region = 78 }

</bundles_post_ra>
